<compile_context>
chip_gen: v7x
topology: tpu7x:2x2x1
jax: 0.10.0
libtpu: 0.0.40
codegen_flags: <defaults>
</compile_context>

<pallas_src>
import functools

import jax
import jax.numpy as jnp
from jax.experimental import pallas as pl
from jax.experimental.pallas import tpu as pltpu


def make_rotary_buffers(dim: int, max_seq_len: int):
    """Mirrors Rotary.__init__ and additionally returns sign-folded compact
    per-head tables, so the forward pass does zero wrapper-side table work.

    Returns:
      cos, sin : (max_seq_len, dim // 2) f32   (same as the PyTorch buffers)
      c_tab    : (max_seq_len, dim) f32  = [cos,  cos]  per head
      s_tab    : (max_seq_len, dim) f32  = [sin, -sin]  per head
    """
    angular_freq = (1.0 / 1024.0) ** jnp.linspace(
        0.0, 1.0, num=dim // 4, dtype=jnp.float32
    )
    angular_freq = jnp.concatenate(
        [angular_freq, jnp.zeros((dim // 4,), dtype=jnp.float32)]
    )  # (dim // 2,)
    t = jnp.arange(max_seq_len, dtype=jnp.float32)
    theta = jnp.einsum("i,j->ij", t, angular_freq)  # (max_seq_len, dim // 2)
    cos, sin = jnp.cos(theta), jnp.sin(theta)
    c_tab = jnp.concatenate([cos, cos], axis=-1)    # (max_seq_len, dim)
    s_tab = jnp.concatenate([sin, -sin], axis=-1)   # (max_seq_len, dim)
    return cos, sin, c_tab, s_tab


def _rotary_kernel(c_ref, s_ref, x_ref, o_ref, *, head_dim):
    # x_ref block: (1, T_tile, H*D); table blocks: (T_tile, D) compact, f32.
    x = x_ref[0].astype(jnp.float32)                  # (T_tile, H*D)
    t_tile, hd = x.shape
    half = head_dim // 2
    n_heads = hd // head_dim

    # Expand compact per-head tables across heads in-kernel: pure vreg
    # replication when head_dim is a multiple of 128, cheap lane concat
    # otherwise.  No HBM cost either way.
    c = jnp.tile(c_ref[...], (1, n_heads))            # (T_tile, H*D)
    s = jnp.tile(s_ref[...], (1, n_heads))            # (T_tile, H*D)

    # Full-lane-axis rolls run on the XLU (free next to the VPU):
    #   x_fwd[l] = x[l + half]  -> x2 onto first-half lanes of each head
    #   x_bwd[l] = x[l - half]  -> x1 onto second-half lanes of each head
    x_fwd = pltpu.roll(x, shift=hd - half, axis=1)
    x_bwd = pltpu.roll(x, shift=half, axis=1)

    # Compile-time lane mask picks the in-head rolled operand, so the lanes
    # where a roll crossed a head boundary are never used.
    lane = jax.lax.broadcasted_iota(jnp.int32, (t_tile, hd), 1)
    x_sel = jnp.where((lane % head_dim) < half, x_fwd, x_bwd)

    # Per head:  y1 = x1*cos + x2*sin ;  y2 = x2*cos + x1*(-sin)
    o_ref[0] = (x * c + x_sel * s).astype(o_ref.dtype)


def _vmem_capacity_bytes() -> int:
    try:
        return int(pltpu.get_tpu_info().vmem_capacity_bytes)
    except Exception:
        return 64 * 1024 * 1024  # conservative fallback (v7x per-TC VMEM)


def _pick_t_tile(T: int, HD: int, D: int, x_itemsize: int, vmem_cap: int) -> int:
    """Largest multiple-of-16 T tile keeping the working set well under VMEM."""
    budget = min(vmem_cap // 4, 16 * 1024 * 1024)
    cap = 1024 if vmem_cap >= 96 * 1024 * 1024 else 512  # v5e/v6e vs v7x
    per_row = (
        2 * 2 * HD * x_itemsize   # x in + out, double-buffered
        + 2 * 2 * D * 4           # compact C/S tables, double-buffered
        + 4 * HD * 4              # in-kernel f32 temporaries (rolls, select)
    )
    t = min(cap, budget // max(per_row, 1))
    t = max(16, (t // 16) * 16)   # bf16 packs 16 sublanes per vreg
    return min(T, t)


def rotary_forward(x_BTHD, c_tab, s_tab):
    B, T, H, D = x_BTHD.shape
    assert D % 2 == 0
    assert c_tab.shape[0] >= T and c_tab.shape[1] == D, "max_seq_len must be >= T"
    HD = H * D
    # NOTE: lane-dense (unmasked) stores need H*D % 128 == 0; otherwise the
    # kernel is still correct, just uses masked stores.

    # Free, contiguous view: (B, T, H, D) -> (B, T, H*D).
    x2d = x_BTHD.reshape(B, T, HD)

    vmem_cap = _vmem_capacity_bytes()
    t_tile = _pick_t_tile(T, HD, D, x_BTHD.dtype.itemsize, vmem_cap)
    grid = (pl.cdiv(T, t_tile), B)  # B innermost -> table blocks reused across batch

    kernel = functools.partial(_rotary_kernel, head_dim=D)

    out2d = pl.pallas_call(
        kernel,
        out_shape=jax.ShapeDtypeStruct((B, T, HD), x_BTHD.dtype),
        grid=grid,
        in_specs=[
            pl.BlockSpec((t_tile, D), lambda t, b: (t, 0)),          # C compact
            pl.BlockSpec((t_tile, D), lambda t, b: (t, 0)),          # S compact, sign-folded
            pl.BlockSpec((1, t_tile, HD), lambda t, b: (b, t, 0)),   # x
        ],
        out_specs=pl.BlockSpec((1, t_tile, HD), lambda t, b: (b, t, 0)),
        compiler_params=pltpu.CompilerParams(
            # T parallel (megacore shards T, preserving per-core table reuse);
            # B arbitrary (innermost revisit axis for the table blocks).
            dimension_semantics=("parallel", "arbitrary"),
            vmem_limit_bytes=min(48 * 1024 * 1024, vmem_cap * 3 // 4),
        ),
    )(c_tab, s_tab, x2d)

    return out2d.reshape(B, T, H, D)


def _reference(x_BTHD, cos_full, sin_full):
    T = x_BTHD.shape[1]
    cos = cos_full[None, :T, None, :]
    sin = sin_full[None, :T, None, :]
    xf = x_BTHD.astype(jnp.float32)
    d_half = xf.shape[-1] // 2
    x1, x2 = xf[..., :d_half], xf[..., d_half:]
    y1 = x1 * cos + x2 * sin
    y2 = x1 * (-sin) + x2 * cos
    return jnp.concatenate([y1, y2], axis=-1).astype(x_BTHD.dtype)


if __name__ == "__main__":
    B, T, H, D = 2, 8, 4, 32  # x_BTHD: (batch, seq, heads, head_dim)
    MAX_SEQ_LEN = 16

    cos_full, sin_full, c_tab, s_tab = make_rotary_buffers(D, MAX_SEQ_LEN)

    key = jax.random.PRNGKey(0)
    x = jax.random.normal(key, (B, T, H, D), dtype=jnp.float32).astype(jnp.bfloat16)

    out = rotary_forward(x, c_tab, s_tab)
    out = jax.block_until_ready(out)

    ref = _reference(x, cos_full, sin_full)
    assert out.shape == x.shape and out.dtype == x.dtype
    assert jnp.allclose(
        out.astype(jnp.float32), ref.astype(jnp.float32), atol=1e-2, rtol=1e-2
    )
    print("KERNEL_OK")
</pallas_src>

<mosaic_0001>
module attributes {stable_mosaic.version = 11 : i64} {
  func.func @_rotary_kernel(%arg0: i32, %arg1: i32, %arg2: memref<8x32xf32, #tpu.memory_space<vmem>>, %arg3: memref<8x32xf32, #tpu.memory_space<vmem>>, %arg4: memref<1x8x128xbf16, #tpu.memory_space<vmem>>, %arg5: memref<1x8x128xbf16, #tpu.memory_space<vmem>>) attributes {dimension_semantics = [#tpu.dimension_semantics<parallel>, #tpu.dimension_semantics<arbitrary>], iteration_bounds = array<i64: 1, 2>, scalar_prefetch = 0 : i64, scratch_operands = 0 : i64, tpu.core_type = #tpu.core_type<tc>, window_params = [{transform_indices = @transform_0, window_bounds = array<i64: 8, 32>}, {transform_indices = @transform_1, window_bounds = array<i64: 8, 32>}, {transform_indices = @transform_2, window_bounds = array<i64: 1, 8, 128>}, {transform_indices = @transform_3, window_bounds = array<i64: 1, 8, 128>}]} {
    %c0 = arith.constant 0 : index
    %c0_0 = arith.constant 0 : index
    %c0_1 = arith.constant 0 : index
    %0 = vector.load %arg4[%c0, %c0_0, %c0_1] : memref<1x8x128xbf16, #tpu.memory_space<vmem>>, vector<1x8x128xbf16>
    %1 = vector.shape_cast %0 : vector<1x8x128xbf16> to vector<8x128xbf16>
    %2 = arith.extf %1 : vector<8x128xbf16> to vector<8x128xf32>
    %c0_2 = arith.constant 0 : index
    %c0_3 = arith.constant 0 : index
    %3 = vector.load %arg2[%c0_2, %c0_3] : memref<8x32xf32, #tpu.memory_space<vmem>>, vector<8x32xf32>
    %4 = tpu.concatenate %3, %3, %3, %3 in 1 : vector<8x32xf32>, vector<8x32xf32>, vector<8x32xf32>, vector<8x32xf32> -> vector<8x128xf32>
    %c0_4 = arith.constant 0 : index
    %c0_5 = arith.constant 0 : index
    %5 = vector.load %arg3[%c0_4, %c0_5] : memref<8x32xf32, #tpu.memory_space<vmem>>, vector<8x32xf32>
    %6 = tpu.concatenate %5, %5, %5, %5 in 1 : vector<8x32xf32>, vector<8x32xf32>, vector<8x32xf32>, vector<8x32xf32> -> vector<8x128xf32>
    %c112_i32 = arith.constant 112 : i32
    %7 = tpu.dynamic_rotate %2 by %c112_i32 dim 1 : vector<8x128xf32>, i32 -> vector<8x128xf32>
    %c16_i32 = arith.constant 16 : i32
    %8 = tpu.dynamic_rotate %2 by %c16_i32 dim 1 : vector<8x128xf32>, i32 -> vector<8x128xf32>
    %9 = tpu.iota {dimensions = array<i32: 1>} : vector<8x128xi32>
    %c32_i32 = arith.constant 32 : i32
    %c0_i32 = arith.constant 0 : i32
    %10 = arith.cmpi eq, %c32_i32, %c0_i32 : i32
    %c1_i32 = arith.constant 1 : i32
    %11 = arith.select %10, %c1_i32, %c32_i32 : i32
    %12 = vector.broadcast %11 : i32 to vector<8x128xi32>
    %13 = arith.remsi %9, %12 : vector<8x128xi32>
    %c0_i32_6 = arith.constant 0 : i32
    %14 = vector.broadcast %c0_i32_6 : i32 to vector<8x128xi32>
    %15 = arith.cmpi ne, %13, %14 : vector<8x128xi32>
    %c0_i32_7 = arith.constant 0 : i32
    %16 = vector.broadcast %c0_i32_7 : i32 to vector<8x128xi32>
    %17 = arith.cmpi slt, %13, %16 : vector<8x128xi32>
    %c0_i32_8 = arith.constant 0 : i32
    %18 = arith.cmpi slt, %11, %c0_i32_8 : i32
    %19 = vector.broadcast %18 : i1 to vector<8x128xi1>
    %20 = vector.broadcast %19 : vector<8x128xi1> to vector<8x128xi1>
    %21 = arith.xori %17, %20 : vector<8x128xi1>
    %22 = arith.andi %21, %15 : vector<8x128xi1>
    %23 = vector.broadcast %11 : i32 to vector<8x128xi32>
    %24 = arith.addi %13, %23 : vector<8x128xi32>
    %25 = arith.select %22, %24, %13 : vector<8x128xi1>, vector<8x128xi32>
    %c16_i32_9 = arith.constant 16 : i32
    %26 = vector.broadcast %c16_i32_9 : i32 to vector<8x128xi32>
    %27 = arith.cmpi slt, %25, %26 : vector<8x128xi32>
    %28 = arith.select %27, %7, %8 : vector<8x128xi1>, vector<8x128xf32>
    %29 = arith.mulf %2, %4 : vector<8x128xf32>
    %30 = arith.mulf %28, %6 : vector<8x128xf32>
    %31 = arith.addf %29, %30 : vector<8x128xf32>
    %32 = arith.truncf %31 : vector<8x128xf32> to vector<8x128xbf16>
    %c0_10 = arith.constant 0 : index
    %c0_11 = arith.constant 0 : index
    %c0_12 = arith.constant 0 : index
    %33 = vector.load %arg5[%c0_10, %c0_11, %c0_12] : memref<1x8x128xbf16, #tpu.memory_space<vmem>>, vector<1x8x128xbf16>
    %34 = vector.shape_cast %33 : vector<1x8x128xbf16> to vector<8x128xbf16>
    %35 = vector.shape_cast %32 : vector<8x128xbf16> to vector<1x8x128xbf16>
    tpu.vector_store %arg5[%c0_10, %c0_11, %c0_12], %35 {strides = array<i32>} : memref<1x8x128xbf16, #tpu.memory_space<vmem>>, vector<1x8x128xbf16>,
    return
  }
  func.func @transform_0(%arg0: i32, %arg1: i32) -> (i32, i32) {
    %c0_i32 = arith.constant 0 : i32
    %c0_i32_0 = arith.constant 0 : i32
    return %arg0, %c0_i32 : i32, i32
  }
  func.func @transform_1(%arg0: i32, %arg1: i32) -> (i32, i32) {
    %c0_i32 = arith.constant 0 : i32
    %c0_i32_0 = arith.constant 0 : i32
    return %arg0, %c0_i32 : i32, i32
  }
  func.func @transform_2(%arg0: i32, %arg1: i32) -> (i32, i32, i32) {
    %c0_i32 = arith.constant 0 : i32
    %c0_i32_0 = arith.constant 0 : i32
    return %arg1, %arg0, %c0_i32 : i32, i32, i32
  }
  func.func @transform_3(%arg0: i32, %arg1: i32) -> (i32, i32, i32) {
    %c0_i32 = arith.constant 0 : i32
    %c0_i32_0 = arith.constant 0 : i32
    return %arg1, %arg0, %c0_i32 : i32, i32, i32
  }
}

</mosaic_0001>

<bundles_post_ra>
// kernel: tpu_custom_call.1
= control target key start
LH: loop header
LB: loop body
LE: loop exit
PB: predicated region body
PF: predicated region fallthrough
CT: control target
= control target key end

     0   :  { %8 = vsyncpa [#allocation3], 0  ;;  %s980_s0 = inlined_call_operand.hbm [shape: f32[16,32], index: 0, kind: input, shape index: {}]   ;;  %s981_s1 = inlined_call_operand.hbm [shape: f32[16,32], index: 1, kind: input, shape index: {}]   ;;  %s982_s2 = inlined_call_operand.hbm [shape: bf16[2,8,128], index: 2, kind: input, shape index: {}]   ;;  %s983_s3 = inlined_call_operand.hbm [shape: bf16[2,8,128], index: 3, kind: output, shape index: {}]  }
   0x1   :  { %9 = vsyncpa [#allocation6], 0 }
   0x2   :  { %10 = vsyncpa [#allocation4], 0 }
   0x3   :  { %12 = vsyncpa [#allocation4 + $0x1], 0  ;;  %s728_s12 = smov 0   ;;  %s730_s13 = smov 0  }
   0x4   :  { %s732_s14 = smov 0   ;;  %s734_s15 = smov 0  }
   0x5   :  { %s736_s16 = smov 0   ;;  %s738_s17 = smov 0  }
   0x6 LB: > { %s759_s18 = sadd.s32 4294967295, %s697_s17   ;;  %s417_s19 = sadd.s32 4294967294, %s697_s17   ;;  %s697_s17 = sphi %s738_s17, %s18_s17   ;;  %s693_s16 = sphi %s736_s16, %s1006_s16   ;;  %s689_s15 = sphi %s734_s15, %s1005_s15   ;;  %s685_s14 = sphi %s732_s14, %s1004_s14   ;;  %s681_s13 = sphi %s730_s13, %s1003_s13   ;;  %s677_s12 = sphi %s728_s12, %s1002_s12  }
   0x7   : > { %p104_p0 = scmp.ne.s32.totalorder %s681_s13, %s677_s12  ;;  %p984_p1 = scmp.eq.s32.totalorder %s759_s18, 0 }
   0x8   : > { %p136_p3 = scmp.eq.s32.totalorder %s417_s19, 1  ;;  %p418_p5 = scmp.ge.s32.totalorder %s697_s17, 1 }
   0x9   : > { %p768_p4 = por %p984_p1, %p104_p0  ;;  %p143_p7 = scmp.lt.s32.totalorder %s697_s17, 3 }
   0xa   : > { %p773_p6 = por %p136_p3, %p104_p0  ;;  %s699_s23 = smov [#allocation2]  }
   0xb   : > { %s987_s20 = scalar_select %p768_p4, 1, 0 }
   0xc   : > { %s988_s21 = scalar_select %p773_p6, 1, 0 }
   0xd   : > { %p778_p8 = pnand %p418_p5, %p143_p7  ;;  %s158_s24 = sshll.u32 %s699_s23, 4  ;;  %s159_s24 = int_to_ptr.vmem [resolvable:$true] %s158_s24 }
   0xe   : > { %s700_s25 = smov [#allocation5]   ;;  %s521_s30 = scalar_lea.hbm %s980_s0, 128 }
   0xf   : > { %s989_s22 = scalar_select %p778_p8, 1, 0 }
  0x10   : > { %p445_p10 = pneg %p778_p8  ;;  %s171_s26 = sshll.u32 %s700_s25, 4  ;;  %s791_s26 = int_to_ptr.vmem [resolvable:$true] %s171_s26 }
  0x11   : > { %p522_p12 = scmp.ne.s32.totalorder %s980_s0, %s521_s30  ;;  %s526_s8 = scalar_lea.hbm %s980_s0, 256 }
  0x12   : > { %p787_p11 = pnand %p445_p10, %p984_p1  ;;  %p527_p5 = scmp.lt.u32.totalorder %s526_s8, %s521_s30 }
  0x13   : > { %p528_p7 = scmp.lt.u32.totalorder %s521_s30, %s980_s0 }
  0x14   : > { %p523_p13 = pneg %p787_p11 }
  0x15   : > { %p529_p10 = por %p528_p7, %p527_p5 }
  0x16   : > { %p524_p0 = pnand %p523_p13, %p522_p12 }
  0x18   : > { %p525_p3 = pneg %p524_p0 }
  0x1a   : > { %p530_p9 = pnand %p529_p10, %p525_p3 }
  0x1c   : > { %533 = shalt.err (!%p530_p9)
}
  0x1d   : > { %s534_s11 = scalar_lea.vmem %s159_s24, 128  ;;  %p542_p0 = scmp.lt.s32.totalorder %s159_s24, %s159_s24 }
  0x1e   : > { %p535_p1 = scmp.ne.s32.totalorder %s159_s24, %s534_s11  ;;  %p543_p6 = scmp.lt.s32.totalorder %s534_s11, %s534_s11 }
  0x20   : > { %p537_p2 = pnand %p535_p1, %p523_p13  ;;  %p544_p4 = por %p543_p6, %p542_p0 }
  0x22   : > { %p538_p12 = pneg %p537_p2 }
  0x24   : > { %p545_p8 = pnand %p544_p4, %p538_p12 }
  0x26   : > { %548 = shalt.err (!%p545_p8)
}
  0x27   : > { %448 = dma.hbm_to_vmem [thread:$0]  (!%p787_p11), %s980_s0, 128, %s159_s24, [#allocation3]  }
  0x28   : > { %s549_s29 = scalar_lea.hbm %s981_s1, 128  ;;  %s554_s7 = scalar_lea.hbm %s981_s1, 256 }
  0x29   : > { %p550_p1 = scmp.ne.s32.totalorder %s981_s1, %s549_s29  ;;  %p555_p6 = scmp.lt.u32.totalorder %s554_s7, %s549_s29 }
  0x2a   : > { %p556_p8 = scmp.lt.u32.totalorder %s549_s29, %s981_s1 }
  0x2b   : > { %p552_p2 = pnand %p550_p1, %p523_p13 }
  0x2c   : > { %p557_p9 = por %p556_p8, %p555_p6 }
  0x2d   : > { %p553_p4 = pneg %p552_p2 }
  0x2f   : > { %p558_p3 = pnand %p557_p9, %p553_p4 }
  0x31   : > { %561 = shalt.err (!%p558_p3)
}
  0x32   : > { %s562_s24 = scalar_lea.vmem %s791_s26, 128  ;;  %p570_p12 = scmp.lt.s32.totalorder %s791_s26, %s791_s26 }
  0x33   : > { %p563_p5 = scmp.ne.s32.totalorder %s791_s26, %s562_s24  ;;  %p571_p0 = scmp.lt.s32.totalorder %s562_s24, %s562_s24 }
  0x35   : > { %p565_p7 = pnand %p563_p5, %p523_p13  ;;  %p572_p1 = por %p571_p0, %p570_p12 }
  0x37   : > { %p566_p10 = pneg %p565_p7 }
  0x39   : > { %p573_p2 = pnand %p572_p1, %p566_p10 }
  0x3b   : > { %576 = shalt.err (!%p573_p2)
}
  0x3c   : > { %451 = dma.hbm_to_vmem [thread:$0]  (!%p787_p11), %s981_s1, 128, %s791_s26, [#allocation6]  }
  0x3d   : > { %s27_s19 = sadd.s32 1, %s693_s16  ;;  %s91_s23 = sadd.s32 1, %s685_s14 }
  0x3e   : > { %p28_p13 = scmp.ge.s32.totalorder %s27_s19, 2  ;;  %p98_p4 = scmp.ne.s32.totalorder %s685_s14, %s681_s13 }
  0x3f   : > { %p99_p6 = scmp.eq.s32.totalorder %s697_s17, 0  ;;  %p462_p8 = scmp.lt.s32.totalorder %s697_s17, 2 }
  0x40   : > { %s1008_s19 = smov (%p28_p13, %s27_s19), 0  ;;  %p991_p3 = scmp.eq.s32.totalorder %s759_s18, 1 }
  0x41   : > { %p100_p9 = por %p99_p6, %p98_p4  ;;  %s86_s25 = ssub.s32 %s693_s16, %s1008_s19 }
  0x42   : > { %p856_p5 = por %p991_p3, %p98_p4  ;;  %s182_s28 = sand.u32 1, %s697_s17  }
  0x43   : > { %p89_p7 = scmp.eq.s32.totalorder %s86_s25, 0  ;;  %s184_s29 = sand.u32 1, %s685_s14  }
  0x44   : > { %s423_s26 = sshll.u32 %s693_s16, 6  ;;  %s422_s4 = sshll.u32 %s184_s29, 2 }
  0x45   : > { %s866_s30 = scalar_select %p89_p7, %s685_s14, %s91_s23  }
  0x46   : > { %s871_s7 = scalar_lea.hbm %s982_s2, %s423_s26  ;;  %p873_p11 = pnand %p462_p8, %p100_p9 }
  0x47   : > { %s186_s9 = scalar_lea.vmem [#allocation7], %s422_s4  ;;  %s183_s10 = scalar_lea.sflag [#allocation3], %s182_s28 }
  0x48   : > { %s194_s24 = sshll.u32 %s186_s9, 4  ;;  %s577_s11 = scalar_lea.hbm %s871_s7, 64  ;;  %s877_s24 = int_to_ptr.vmem [resolvable:$true] %s194_s24 }
  0x49   : > { %p578_p10 = scmp.ne.s32.totalorder %s871_s7, %s577_s11  ;;  %p579_p12 = pneg %p873_p11 }
  0x4a   : > { %s582_s29 = scalar_lea.hbm %s982_s2, 128  ;;  %p583_p2 = scmp.lt.u32.totalorder %s871_s7, %s982_s2 }
  0x4b   : > { %p580_p0 = pnand %p579_p12, %p578_p10  ;;  %p584_p13 = scmp.lt.u32.totalorder %s582_s29, %s577_s11 }
  0x4c   : > { %p586_p6 = scmp.lt.u32.totalorder %s577_s11, %s871_s7 }
  0x4d   : > { %p581_p1 = pneg %p580_p0  ;;  %p585_p4 = por %p584_p13, %p583_p2 }
  0x4f   : > { %p587_p8 = por %p586_p6, %p585_p4 }
  0x51   : > { %p588_p9 = pnand %p587_p8, %p581_p1 }
  0x53   : > { %591 = shalt.err (!%p588_p9)
}
  0x54   : > { %s592_s28 = scalar_lea.vmem %s877_s24, 64  ;;  %s701_s4 = smov [#allocation7]  }
  0x55   : > { %p593_p3 = scmp.ne.s32.totalorder %s877_s24, %s592_s28  ;;  %s597_s6 = sshll.u32 %s701_s4, 4  ;;  %s598_s6 = int_to_ptr.vmem [resolvable:$false] %s597_s6 }
  0x56   : > { %s599_s9 = scalar_lea.vmem %s598_s6, 128  ;;  %p600_p0 = scmp.lt.s32.totalorder %s877_s24, %s598_s6 }
  0x57   : > { %p595_p7 = pnand %p593_p3, %p579_p12  ;;  %p601_p2 = scmp.lt.s32.totalorder %s599_s9, %s592_s28 }
  0x59   : > { %p596_p10 = pneg %p595_p7  ;;  %p602_p13 = por %p601_p2, %p600_p0 }
  0x5b   : > { %p603_p4 = pnand %p602_p13, %p596_p10 }
  0x5d   : > { %606 = shalt.err (!%p603_p4)
}
  0x5e   : > { %455 = dma.hbm_to_vmem [thread:$0]  (!%p873_p11), %s871_s7, 64, %s877_s24, %s183_s10  }
  0x5f   : > { %p994_p1 = scmp.ne.s32.totalorder %s989_s22, 0 }
  0x60   : > { %p995_p12 = scmp.eq.s32.totalorder (!%p994_p1), %s759_s18, 0 }
  0x61   : > { %203 = sbr.rel (%p994_p1) target bundleno = 263 (0x107), region = 32 }
  0x68   : > { %660 = dma.done.wait (%p995_p12), [#allocation3], 128   ;;  %p996_p6 = pmov %p995_p12 }
  0x6a   : > { %662 = vsyncadd (%p996_p6), [#allocation3], 4294967168  ;;  %p997_p8 = pmov %p996_p6 }
  0x6b   : > { %p998_p9 = pmov %p996_p6 }
  0x6c   : > { %664 = dma.done.wait (%p997_p8), [#allocation6], 128  }
  0x6d   : > { %666 = vsyncadd (%p998_p9), [#allocation6], 4294967168  ;;  %s213_s7 = sand.u32 1, %s759_s18   ;;  %s215_s8 = sand.u32 1, %s681_s13  }
  0x6e   : > { %s918_s22 = sshll.u32 %s215_s8, 2  ;;  %s214_s24 = scalar_lea.sflag [#allocation3], %s213_s7 }
  0x6f   : > { %s217_s10 = scalar_lea.vmem [#allocation7], %s918_s22  ;;  %p999_p11 = scmp.ne.s32.totalorder %s987_s20, 0 }
  0x71   : > { %668 = dma.done.wait (%p999_p11), %s214_s24, 64  }
  0x72   : > { %670 = vsyncadd (%p999_p11), %s214_s24, 4294967232  ;;  %v242_v0 = vld [vmem:[#allocation2] sm:$0xff]  ;;  %s702_s11 = smov 64   ;;  %s703_s23 = smov 32   ;;  %v259_v1 = vld [vmem:[#allocation5] sm:$0xff]  ;;  %v277_v4 = vlaneseq  ;;  %vm253_vm0 = vcmask 261120  }
  0x73   : > { %247 = vrot.lane.b32.xlu1 %v242_v0, %s702_s11  ;;  %244 = vrot.lane.b32.xlu0 %v242_v0, %s703_s23  ;;  %v240_v2 = vld [vmem:[%s217_s10] sm:$0xf]  ;;  %s704_s18 = smov 96   ;;  %s705_s25 = smov 16   ;;  %vm255_vm1 = vcmask 523264   ;;  %vm257_vm2 = vcmask 785408  }
  0x74   : > { %v241_v3 = vunpack.c.l.bf16 %v240_v2  ;;  %s706_s29 = smov 112   ;;  %v278_v7 = vand.u32 127, %v277_v4  ;;  %s430_s20 = sshll.u32 %s689_s15, 6 }
  0x75   : > { %s239_s26 = scalar_lea.vmem [#allocation8], %s918_s22  ;;  %s930_s6 = scalar_lea.hbm %s983_s3, %s430_s20 }
  0x76   : > { %v283_v10 = vand.u32 31, %v278_v7  ;;  %s313_s5 = sshll.u32 %s239_s26, 4  ;;  %s299_s9 = scalar_lea.sflag [#allocation4], %s215_s8  ;;  %s932_s5 = int_to_ptr.vmem [resolvable:$true] %s313_s5 }
  0x77   : > { %264 = vrot.lane.b32.xlu1 %v259_v1, %s702_s11  ;;  %261 = vrot.lane.b32.xlu0 %v259_v1, %s703_s23  ;;  %s607_s7 = scalar_lea.vmem %s932_s5, 64  ;;  %s707_s15 = smov [#allocation8]  }
  0x78   : > { %vm291_vm3 = vcmp.lt.s32.totalorder %v283_v10, 16  ;;  %p608_p3 = scmp.ne.s32.totalorder %s932_s5, %s607_s7  ;;  %s611_s22 = sshll.u32 %s707_s15, 4  ;;  %s612_s22 = int_to_ptr.vmem [resolvable:$false] %s611_s22 }
  0x79   : > { %s613_s24 = scalar_lea.vmem %s612_s22, 128  ;;  %p614_p0 = scmp.lt.s32.totalorder %s932_s5, %s612_s22 }
  0x7a   : > { %p609_p7 = pnand %p608_p3, %p856_p5  ;;  %p615_p2 = scmp.lt.s32.totalorder %s613_s24, %s607_s7 }
  0x7b   : > { %267 = vrot.lane.b32.xlu1 %v259_v1, %s704_s18  ;;  %250 = vrot.lane.b32.xlu0 %v242_v0, %s704_s18 }
  0x7c   : > { %p610_p10 = pneg %p609_p7  ;;  %p616_p13 = por %p615_p2, %p614_p0 }
  0x7e   : > { %p617_p4 = pnand %p616_p13, %p610_p10 }
  0x7f   : > { %275 = vrot.lane.b32.xlu1 %v241_v3, %s705_s25  ;;  %273 = vrot.lane.b32.xlu0 %v241_v3, %s706_s29 }
  0xe5   : > { %v248_v5 = vpop.permute.xlu1 %247  ;;  %v245_v6 = vpop.permute.xlu0 %244 }
  0xe6   : > { %v254_v11 = vsel %vm253_vm0, %v242_v0, %v245_v6 }
  0xe7   : > { %v256_v15 = vsel %vm255_vm1, %v254_v11, %v248_v5 }
  0xe9   : > { %v265_v8 = vpop.permute.xlu1 %264  ;;  %v262_v9 = vpop.permute.xlu0 %261 }
  0xea   : > { %v270_v14 = vsel %vm253_vm0, %v259_v1, %v262_v9 }
  0xeb   : > { %v271_v17 = vsel %vm255_vm1, %v270_v14, %v265_v8 }
  0xed   : > { %v268_v12 = vpop.permute.xlu1 %267  ;;  %v251_v13 = vpop.permute.xlu0 %250 }
  0xee   : > { %v258_v16 = vsel %vm257_vm2, %v256_v15, %v251_v13  ;;  %v272_v20 = vsel %vm257_vm2, %v271_v17, %v268_v12 }
  0xef   : > { %v293_v22 = vmul.f32 %v258_v16, %v241_v3 }
  0xf1   : > { %v276_v18 = vpop.permute.xlu1 %275  ;;  %v274_v19 = vpop.permute.xlu0 %273 }
  0xf2   : > { %v292_v21 = vsel %vm291_vm3, %v274_v19, %v276_v18 }
  0xf3   : > { %v294_v23 = vmul.f32 %v292_v21, %v272_v20 }
  0xf5   : > { %v295_v24 = vadd.f32 %v294_v23, %v293_v22 }
  0xf7   : > { %v296_v25 = vpack.c.bf16 %v295_v24, %v295_v24 }
  0xf9   : > { %297 = vst [vmem:[%s239_s26] sm:$0xf] %v296_v25 }
  0xfa   : > { %620 = shalt.err (!%p617_p4)
}
  0xfb   : > { %s621_s8 = scalar_lea.hbm %s930_s6, 64  ;;  %s625_s23 = scalar_lea.hbm %s983_s3, 128 }
  0xfc   : > { %p622_p1 = scmp.ne.s32.totalorder %s930_s6, %s621_s8  ;;  %p626_p8 = scmp.lt.u32.totalorder %s930_s6, %s983_s3 }
  0xfd   : > { %p627_p9 = scmp.lt.u32.totalorder %s625_s23, %s621_s8  ;;  %p629_p3 = scmp.lt.u32.totalorder %s621_s8, %s930_s6 }
  0xfe   : > { %p623_p12 = pnand %p622_p1, %p856_p5 }
  0xff   : > { %p628_p11 = por %p627_p9, %p626_p8 }
 0x100   : > { %p624_p6 = pneg %p623_p12 }
 0x101   : > { %p630_p7 = por %p629_p3, %p628_p11 }
 0x103   : > { %p631_p10 = pnand %p630_p7, %p624_p6 }
 0x105   : > { %634 = shalt.err (!%p631_p10)
}
 0x106   : > { %443 = dma.vmem_to_hbm [thread:$0]  (%p856_p5), %s932_s5, 64, %s930_s6, %s299_s9  }
 0x107 PF: > { %s325_s29 = sand.u32 1, %s677_s12   ;;  %p1000_p0 = scmp.ne.s32.totalorder %s988_s21, 0 }
 0x108   : > { %p1001_p2 = scmp.ge.s32.totalorder %s697_s17, 2  ;;  %s326_s20 = scalar_lea.sflag [#allocation4], %s325_s29 }
 0x10a   : > { %p457_p13 = pnand %p1001_p2, %p1000_p0 }
 0x10c   : > { %672 = dma.done.wait (!%p457_p13), %s326_s20, 64  }
 0x10d   : > { %674 = vsyncadd (!%p457_p13), %s326_s20, 4294967232  ;;  %s18_s17 = sadd.s32 1, %s697_s17   ;;  %s1002_s12 = smov %s681_s13 }
 0x10e   : > { %p15_p4 = scmp.ge.s32.totalorder %s18_s17, 4   ;;  %s1003_s13 = smov %s685_s14 }
 0x10f   : > { %s1004_s14 = smov %s866_s30  ;;  %s1005_s15 = smov %s693_s16 }
 0x110   : > { %s1006_s16 = smov %s1008_s19  ;;  %17 = sbr.rel (!%p15_p4) target bundleno = 6 (0x6), region = 86 }
 0x117   :  { %331 = vsyncpa [#allocation3], 1 }
 0x118   :  { %333 = vsyncpa [#allocation3 + $0x1], 1 }
 0x119   :  { %334 = vsyncpa [#allocation6], 1 }
 0x11a   :  { %335 = vsyncpa [#allocation4], 1 }
 0x11b   :  { %337 = vsyncpa [#allocation4 + $0x1], 1 }

</bundles_post_ra>
